<compile_context>
chip_gen: v5e
topology: v5e:2x2
jax: 0.10.0
libtpu: 0.0.40
codegen_flags: <defaults>
</compile_context>

<pallas_src>
import jax
import jax.numpy as jnp
import numpy as np
from jax.experimental import pallas as pl
from jax.experimental.pallas import tpu as pltpu


_SLOPE_11 = 0.5 * (0.01 + 0.33)   # RReLU(0.01, 0.33) eval slope
_SLOPE_2 = 0.5 * (0.33 + 0.66)    # RReLU(0.33, 0.66) eval slope
_SLOPE_3 = 0.5 * (0.66 + 0.99)    # RReLU(0.66, 0.99) eval slope
_EPS = 1e-5

# Fixed sublane offsets (8-aligned groups) inside the f32 parameter slab.
# Each group holds rows [bias, gamma, beta]; V head uses two extra rows.
_P_L1, _P_L2, _P_L3, _P_L4, _P_VW, _P_VB = 0, 8, 16, 24, 32, 33
_P_ROWS = 40


def _round_up(x, m):
    return ((x + m - 1) // m) * m


def _leaky(x, slope):
    return jnp.where(x >= 0, x, slope * x)


def _layernorm(x, gamma, beta, eps=_EPS):
    # Single-pass stats: sum(x) and sum(x*x) are independent cross-lane
    # reductions (can overlap on the XLU), var = E[x^2] - mu^2 (clamped).
    n = x.shape[-1]
    inv_n = 1.0 / n
    mu = jnp.sum(x, axis=-1, keepdims=True) * inv_n
    ex2 = jnp.sum(x * x, axis=-1, keepdims=True) * inv_n
    var = jnp.maximum(ex2 - mu * mu, 0.0)
    return (x - mu) * jax.lax.rsqrt(var + eps) * gamma + beta


def _make_critic_kernel(H, F_IN, off_w2, off_w3, off_w4):
    H2, Hh = 2 * H, H // 2

    def kernel(x_ref, w_ref, p_ref, v_ref):
        # ---- fused front-end: one bf16 dot against the block-diagonal W1
        #      produces [action-branch | state-branch] lane-contiguously.
        y = jnp.dot(x_ref[...], w_ref[0:F_IN, 0:H2],
                    preferred_element_type=jnp.float32)
        y = y + p_ref[_P_L1:_P_L1 + 1, 0:H2]

        # ln11 / ln12 as masked lane-half reductions (lanes 0:H and H:2H).
        lane = jax.lax.broadcasted_iota(jnp.int32, y.shape, 1)
        left = lane < H
        yl = jnp.where(left, y, 0.0)
        yr = y - yl
        inv_h = 1.0 / H
        mu = jnp.where(left,
                       jnp.sum(yl, axis=-1, keepdims=True),
                       jnp.sum(yr, axis=-1, keepdims=True)) * inv_h
        ex2 = jnp.where(left,
                        jnp.sum(yl * yl, axis=-1, keepdims=True),
                        jnp.sum(yr * yr, axis=-1, keepdims=True)) * inv_h
        var = jnp.maximum(ex2 - mu * mu, 0.0)
        y = (y - mu) * jax.lax.rsqrt(var + _EPS)
        y = y * p_ref[_P_L1 + 1:_P_L1 + 2, 0:H2] + p_ref[_P_L1 + 2:_P_L1 + 3, 0:H2]
        y = _leaky(y, _SLOPE_11)

        # ---- cfc2 -> ln2 -> RReLU(0.33, 0.66)  (the cat is already done)
        x = jnp.dot(y.astype(jnp.bfloat16), w_ref[off_w2:off_w2 + H2, 0:H2],
                    preferred_element_type=jnp.float32)
        x = x + p_ref[_P_L2:_P_L2 + 1, 0:H2]
        x = _leaky(_layernorm(x, p_ref[_P_L2 + 1:_P_L2 + 2, 0:H2],
                              p_ref[_P_L2 + 2:_P_L2 + 3, 0:H2]), _SLOPE_2)

        # ---- cfc3 -> ln3 -> RReLU(0.66, 0.99)
        x = jnp.dot(x.astype(jnp.bfloat16), w_ref[off_w3:off_w3 + H2, 0:H],
                    preferred_element_type=jnp.float32)
        x = x + p_ref[_P_L3:_P_L3 + 1, 0:H]
        x = _leaky(_layernorm(x, p_ref[_P_L3 + 1:_P_L3 + 2, 0:H],
                              p_ref[_P_L3 + 2:_P_L3 + 3, 0:H]), _SLOPE_3)

        # ---- cfc4 -> ln4 -> dropout (eval: identity)
        x = jnp.dot(x.astype(jnp.bfloat16), w_ref[off_w4:off_w4 + H, 0:Hh],
                    preferred_element_type=jnp.float32)
        x = x + p_ref[_P_L4:_P_L4 + 1, 0:Hh]
        x = _layernorm(x, p_ref[_P_L4 + 1:_P_L4 + 2, 0:Hh],
                       p_ref[_P_L4 + 2:_P_L4 + 3, 0:Hh])
        # TODO(synk): training-mode dropout (RNG mask) not implemented; eval only.

        # ---- V head: VPU multiply + lane reduce (avoids a (K,1) MXU pass).
        wv = p_ref[_P_VW:_P_VW + 1, 0:Hh]
        bv = p_ref[_P_VB:_P_VB + 1, 0:1]
        v_ref[...] = jnp.sum(x * wv, axis=-1, keepdims=True) + bv
        # TODO(synk): lane-dense (1, tile_b) output / batch-on-lanes layout left
        # for a future rewrite; the (tile_b, 1) column output is kept for
        # lowering safety.

    return kernel


def _choose_tile_b(B, cap=1024):
    b8 = _round_up(max(B, 1), 8)
    if b8 < 16:
        return 8
    # Split into >= 2 tiles so the "parallel" batch axis actually shards across
    # v7x's two TensorCores; cap keeps per-step VMEM small everywhere.
    half = _round_up((b8 + 1) // 2, 8)
    return max(8, min(cap, half))


def critic_forward(states, actions, packed, *, tile_b=None):
    dims = packed["dims"]
    H, F_IN = dims["H"], dims["F_IN"]
    off_w2, off_w3, off_w4 = dims["off_w2"], dims["off_w3"], dims["off_w4"]
    w_slab, p_slab = packed["w"], packed["p"]

    B = states.shape[0]
    A = actions.shape[1]
    S = states.shape[1]

    if tile_b is None:
        tile_b = _choose_tile_b(B)
    tile_b = max(8, (int(tile_b) // 8) * 8)
    Bp = _round_up(max(B, tile_b), tile_b)

    # [actions | states], feature-padded to F_IN (block-diag W1 has zero rows
    # there), cast to bf16 once: MXU-ready operand and half the streamed bytes.
    xcat = jnp.concatenate([actions, states], axis=-1)
    xcat = jnp.pad(xcat, ((0, Bp - B), (0, F_IN - (A + S)))).astype(jnp.bfloat16)

    grid = (Bp // tile_b,)
    kernel = _make_critic_kernel(H, F_IN, off_w2, off_w3, off_w4)

    out = pl.pallas_call(
        kernel,
        out_shape=jax.ShapeDtypeStruct((Bp, 1), jnp.float32),
        grid=grid,
        in_specs=[
            pl.BlockSpec((tile_b, F_IN), lambda i: (i, 0)),   # streamed activations
            pl.BlockSpec(w_slab.shape, lambda i: (0, 0)),     # VMEM-resident weights
            pl.BlockSpec(p_slab.shape, lambda i: (0, 0)),     # VMEM-resident params
        ],
        out_specs=pl.BlockSpec((tile_b, 1), lambda i: (i, 0)),
        compiler_params=pltpu.CompilerParams(
            dimension_semantics=("parallel",)),               # megacore on v7x
    )(xcat, w_slab, p_slab)
    return out[:B]


# ----------------------------- parameters ---------------------------------

def init_params(key, hidden_size, action_dim, num_inputs):
    """Raw (PyTorch-equivalent) parameters: Linear weights stored (in, out)."""
    H = hidden_size
    keys = iter(jax.random.split(key, 24))

    def linear(in_f, out_f):
        bound = 1.0 / np.sqrt(in_f)
        w = jax.random.uniform(next(keys), (in_f, out_f), jnp.float32, -bound, bound)
        b = jax.random.uniform(next(keys), (out_f,), jnp.float32, -bound, bound)
        return w, b

    def affine(feat):
        # LayerNorm affine params (perturbed from 1/0 so the path is exercised).
        g = 1.0 + 0.1 * jax.random.uniform(next(keys), (feat,), jnp.float32, -1.0, 1.0)
        b = 0.1 * jax.random.uniform(next(keys), (feat,), jnp.float32, -1.0, 1.0)
        return g, b

    p = {}
    p["w11"], p["b11"] = linear(action_dim, H)
    p["w12"], p["b12"] = linear(num_inputs, H)
    p["w2"], p["b2"] = linear(2 * H, 2 * H)
    p["w3"], p["b3"] = linear(2 * H, H)
    p["w4"], p["b4"] = linear(H, H // 2)
    wv, bv = linear(H // 2, 1)
    p["wv"] = 0.1 * wv                 # V.weight.data.mul_(0.1)
    p["bv"] = 0.1 * bv                 # V.bias.data.mul_(0.1)
    p["g11"], p["be11"] = affine(H)
    p["g12"], p["be12"] = affine(H)
    p["g2"], p["be2"] = affine(2 * H)
    p["g3"], p["be3"] = affine(H)
    p["g4"], p["be4"] = affine(H // 2)
    return p


def pack_params(raw, hidden_size, action_dim, num_inputs):
    """Pack everything into one bf16 weight slab + one f32 param slab."""
    H, A, S = hidden_size, action_dim, num_inputs
    assert H % 16 == 0 and H >= 16, "hidden_size must be a multiple of 16"
    H2, Hh = 2 * H, H // 2
    F_IN = _round_up(max(A + S, 16), 16)       # 16-aligned bf16 sublane groups

    off_w2 = F_IN
    off_w3 = off_w2 + H2
    off_w4 = off_w3 + H2
    w_rows = off_w4 + H

    w = np.zeros((w_rows, H2), np.float32)
    # block-diagonal front-end: [actions | states] -> [x_b | x_Cbx]
    w[0:A, 0:H] = np.asarray(raw["w11"])
    w[A:A + S, H:H2] = np.asarray(raw["w12"])
    w[off_w2:off_w2 + H2, 0:H2] = np.asarray(raw["w2"])
    w[off_w3:off_w3 + H2, 0:H] = np.asarray(raw["w3"])
    w[off_w4:off_w4 + H, 0:Hh] = np.asarray(raw["w4"])

    p = np.zeros((_P_ROWS, H2), np.float32)
    p[_P_L1 + 0, 0:H] = np.asarray(raw["b11"]);  p[_P_L1 + 0, H:H2] = np.asarray(raw["b12"])
    p[_P_L1 + 1, 0:H] = np.asarray(raw["g11"]);  p[_P_L1 + 1, H:H2] = np.asarray(raw["g12"])
    p[_P_L1 + 2, 0:H] = np.asarray(raw["be11"]); p[_P_L1 + 2, H:H2] = np.asarray(raw["be12"])
    p[_P_L2 + 0, 0:H2] = np.asarray(raw["b2"])
    p[_P_L2 + 1, 0:H2] = np.asarray(raw["g2"])
    p[_P_L2 + 2, 0:H2] = np.asarray(raw["be2"])
    p[_P_L3 + 0, 0:H] = np.asarray(raw["b3"])
    p[_P_L3 + 1, 0:H] = np.asarray(raw["g3"])
    p[_P_L3 + 2, 0:H] = np.asarray(raw["be3"])
    p[_P_L4 + 0, 0:Hh] = np.asarray(raw["b4"])
    p[_P_L4 + 1, 0:Hh] = np.asarray(raw["g4"])
    p[_P_L4 + 2, 0:Hh] = np.asarray(raw["be4"])
    p[_P_VW, 0:Hh] = np.asarray(raw["wv"])[:, 0]
    p[_P_VB, 0] = float(np.asarray(raw["bv"])[0])

    return {
        "w": jnp.asarray(w).astype(jnp.bfloat16),   # bf16 MXU operands
        "p": jnp.asarray(p, dtype=jnp.float32),     # LayerNorm / bias math in f32
        "dims": {"H": H, "F_IN": F_IN,
                 "off_w2": off_w2, "off_w3": off_w3, "off_w4": off_w4},
    }


# ----------------------------- reference ----------------------------------

def jax_reference(states, actions, raw):
    def bdot(x, w):
        # match the kernel: bf16 MXU operands, f32 accumulation
        return jnp.dot(x.astype(jnp.bfloat16), w.astype(jnp.bfloat16),
                       preferred_element_type=jnp.float32)

    def ln(x, g, b, eps=_EPS):
        mu = jnp.mean(x, axis=-1, keepdims=True)
        var = jnp.mean((x - mu) ** 2, axis=-1, keepdims=True)
        return (x - mu) * jax.lax.rsqrt(var + eps) * g + b

    xb = _leaky(ln(bdot(actions, raw["w11"]) + raw["b11"], raw["g11"], raw["be11"]), _SLOPE_11)
    xc = _leaky(ln(bdot(states, raw["w12"]) + raw["b12"], raw["g12"], raw["be12"]), _SLOPE_11)
    x = jnp.concatenate([xb, xc], axis=-1)
    x = _leaky(ln(bdot(x, raw["w2"]) + raw["b2"], raw["g2"], raw["be2"]), _SLOPE_2)
    x = _leaky(ln(bdot(x, raw["w3"]) + raw["b3"], raw["g3"], raw["be3"]), _SLOPE_3)
    x = ln(bdot(x, raw["w4"]) + raw["b4"], raw["g4"], raw["be4"])
    return x @ raw["wv"] + raw["bv"]


# ------------------------------- main --------------------------------------

if __name__ == "__main__":
    ACTION_DIM = 4    # self.num_outputs = action.shape[0]
    NUM_INPUTS = 8    # state feature dim
    HIDDEN = 32       # hidden_size

    key = jax.random.PRNGKey(0)
    k_p, k1, k2, k3, k4 = jax.random.split(key, 5)
    raw = init_params(k_p, HIDDEN, ACTION_DIM, NUM_INPUTS)
    packed = pack_params(raw, HIDDEN, ACTION_DIM, NUM_INPUTS)

    # small batch (single grid step)
    B1 = 8
    states1 = jax.random.normal(k1, (B1, NUM_INPUTS), jnp.float32)
    actions1 = jax.random.normal(k2, (B1, ACTION_DIM), jnp.float32)
    v1 = jax.block_until_ready(critic_forward(states1, actions1, packed))
    ref1 = jax_reference(states1, actions1, raw)
    np.testing.assert_allclose(np.asarray(v1), np.asarray(ref1), rtol=2e-3, atol=2e-3)
    assert v1.shape == (B1, 1)

    # larger, non-multiple batch: exercises padding + a >=2-step grid
    B2 = 40
    states2 = jax.random.normal(k3, (B2, NUM_INPUTS), jnp.float32)
    actions2 = jax.random.normal(k4, (B2, ACTION_DIM), jnp.float32)
    v2 = jax.block_until_ready(critic_forward(states2, actions2, packed))
    ref2 = jax_reference(states2, actions2, raw)
    np.testing.assert_allclose(np.asarray(v2), np.asarray(ref2), rtol=2e-3, atol=2e-3)
    assert v2.shape == (B2, 1)

    print("KERNEL_OK")
</pallas_src>

<mosaic_0001>
module attributes {stable_mosaic.version = 11 : i64} {
  func.func @kernel(%arg0: i32, %arg1: memref<8x16xbf16, #tpu.memory_space<vmem>>, %arg2: memref<176x64xbf16, #tpu.memory_space<vmem>>, %arg3: memref<40x64xf32, #tpu.memory_space<vmem>>, %arg4: memref<8x1xf32, #tpu.memory_space<vmem>>) attributes {dimension_semantics = [#tpu.dimension_semantics<parallel>], iteration_bounds = array<i64: 1>, scalar_prefetch = 0 : i64, scratch_operands = 0 : i64, tpu.core_type = #tpu.core_type<tc>, window_params = [{transform_indices = @transform_0, window_bounds = array<i64: 8, 16>}, {pipeline_mode = #tpu.pipeline_mode<synchronous>, transform_indices = @transform_1, window_bounds = array<i64: 176, 64>}, {pipeline_mode = #tpu.pipeline_mode<synchronous>, transform_indices = @transform_2, window_bounds = array<i64: 40, 64>}, {transform_indices = @transform_3, window_bounds = array<i64: 8, 1>}]} {
    %c0 = arith.constant 0 : index
    %c0_0 = arith.constant 0 : index
    %0 = vector.load %arg1[%c0, %c0_0] : memref<8x16xbf16, #tpu.memory_space<vmem>>, vector<8x16xbf16>
    %c0_1 = arith.constant 0 : index
    %c0_2 = arith.constant 0 : index
    %1 = vector.load %arg2[%c0_1, %c0_2] : memref<176x64xbf16, #tpu.memory_space<vmem>>, vector<16x64xbf16>
    %cst = arith.constant dense<0.000000e+00> : vector<8x64xf32>
    %2 = tpu.matmul %0, %1, %cst {dimension_numbers = #tpu.dot_dimension_numbers<[1], [0], [0], [1], [0, 0, 1, 1], [], []>} : vector<8x16xbf16>, vector<16x64xbf16>, vector<8x64xf32> -> vector<8x64xf32>
    %c0_3 = arith.constant 0 : index
    %c0_4 = arith.constant 0 : index
    %3 = vector.load %arg3[%c0_3, %c0_4] : memref<40x64xf32, #tpu.memory_space<vmem>>, vector<1x64xf32>
    %4 = vector.broadcast %3 : vector<1x64xf32> to vector<8x64xf32>
    %5 = arith.addf %2, %4 : vector<8x64xf32>
    %6 = tpu.iota {dimensions = array<i32: 1>} : vector<8x64xi32>
    %c32_i32 = arith.constant 32 : i32
    %7 = vector.broadcast %c32_i32 : i32 to vector<8x64xi32>
    %8 = arith.cmpi slt, %6, %7 : vector<8x64xi32>
    %cst_5 = arith.constant 0.000000e+00 : f32
    %9 = vector.broadcast %cst_5 : f32 to vector<8x64xf32>
    %10 = arith.select %8, %5, %9 : vector<8x64xi1>, vector<8x64xf32>
    %11 = arith.subf %5, %10 : vector<8x64xf32>
    %cst_6 = arith.constant dense<0.000000e+00> : vector<8xf32>
    %12 = vector.multi_reduction <add>, %10, %cst_6 [1] : vector<8x64xf32> to vector<8xf32>
    %13 = vector.shape_cast %12 : vector<8xf32> to vector<8x1xf32>
    %cst_7 = arith.constant dense<0.000000e+00> : vector<8xf32>
    %14 = vector.multi_reduction <add>, %11, %cst_7 [1] : vector<8x64xf32> to vector<8xf32>
    %15 = vector.shape_cast %14 : vector<8xf32> to vector<8x1xf32>
    %16 = vector.shape_cast %13 : vector<8x1xf32> to vector<8x1xf32>
    %17 = vector.broadcast %16 : vector<8x1xf32> to vector<8x64xf32>
    %18 = vector.shape_cast %15 : vector<8x1xf32> to vector<8x1xf32>
    %19 = vector.broadcast %18 : vector<8x1xf32> to vector<8x64xf32>
    %20 = arith.select %8, %17, %19 : vector<8x64xi1>, vector<8x64xf32>
    %cst_8 = arith.constant 3.125000e-02 : f32
    %21 = vector.broadcast %cst_8 : f32 to vector<8x64xf32>
    %22 = arith.mulf %20, %21 : vector<8x64xf32>
    %23 = arith.mulf %10, %10 : vector<8x64xf32>
    %cst_9 = arith.constant dense<0.000000e+00> : vector<8xf32>
    %24 = vector.multi_reduction <add>, %23, %cst_9 [1] : vector<8x64xf32> to vector<8xf32>
    %25 = vector.shape_cast %24 : vector<8xf32> to vector<8x1xf32>
    %26 = arith.mulf %11, %11 : vector<8x64xf32>
    %cst_10 = arith.constant dense<0.000000e+00> : vector<8xf32>
    %27 = vector.multi_reduction <add>, %26, %cst_10 [1] : vector<8x64xf32> to vector<8xf32>
    %28 = vector.shape_cast %27 : vector<8xf32> to vector<8x1xf32>
    %29 = vector.shape_cast %25 : vector<8x1xf32> to vector<8x1xf32>
    %30 = vector.broadcast %29 : vector<8x1xf32> to vector<8x64xf32>
    %31 = vector.shape_cast %28 : vector<8x1xf32> to vector<8x1xf32>
    %32 = vector.broadcast %31 : vector<8x1xf32> to vector<8x64xf32>
    %33 = arith.select %8, %30, %32 : vector<8x64xi1>, vector<8x64xf32>
    %cst_11 = arith.constant 3.125000e-02 : f32
    %34 = vector.broadcast %cst_11 : f32 to vector<8x64xf32>
    %35 = arith.mulf %33, %34 : vector<8x64xf32>
    %36 = arith.mulf %22, %22 : vector<8x64xf32>
    %37 = arith.subf %35, %36 : vector<8x64xf32>
    %cst_12 = arith.constant 0.000000e+00 : f32
    %38 = vector.broadcast %cst_12 : f32 to vector<8x64xf32>
    %39 = arith.maximumf %37, %38 : vector<8x64xf32>
    %40 = arith.subf %5, %22 : vector<8x64xf32>
    %cst_13 = arith.constant 9.99999974E-6 : f32
    %41 = vector.broadcast %cst_13 : f32 to vector<8x64xf32>
    %42 = arith.addf %39, %41 : vector<8x64xf32>
    %43 = math.rsqrt %42 : vector<8x64xf32>
    %44 = arith.mulf %40, %43 : vector<8x64xf32>
    %c1 = arith.constant 1 : index
    %c0_14 = arith.constant 0 : index
    %45 = vector.load %arg3[%c1, %c0_14] : memref<40x64xf32, #tpu.memory_space<vmem>>, vector<1x64xf32>
    %46 = vector.broadcast %45 : vector<1x64xf32> to vector<8x64xf32>
    %47 = arith.mulf %44, %46 : vector<8x64xf32>
    %c2 = arith.constant 2 : index
    %c0_15 = arith.constant 0 : index
    %48 = vector.load %arg3[%c2, %c0_15] : memref<40x64xf32, #tpu.memory_space<vmem>>, vector<1x64xf32>
    %49 = vector.broadcast %48 : vector<1x64xf32> to vector<8x64xf32>
    %50 = arith.addf %47, %49 : vector<8x64xf32>
    %cst_16 = arith.constant 0.000000e+00 : f32
    %51 = vector.broadcast %cst_16 : f32 to vector<8x64xf32>
    %52 = arith.cmpf oge, %50, %51 : vector<8x64xf32>
    %cst_17 = arith.constant 1.700000e-01 : f32
    %53 = vector.broadcast %cst_17 : f32 to vector<8x64xf32>
    %54 = arith.mulf %53, %50 : vector<8x64xf32>
    %55 = arith.select %52, %50, %54 : vector<8x64xi1>, vector<8x64xf32>
    %56 = arith.truncf %55 : vector<8x64xf32> to vector<8x64xbf16>
    %c16 = arith.constant 16 : index
    %c0_18 = arith.constant 0 : index
    %57 = vector.load %arg2[%c16, %c0_18] : memref<176x64xbf16, #tpu.memory_space<vmem>>, vector<64x64xbf16>
    %cst_19 = arith.constant dense<0.000000e+00> : vector<8x64xf32>
    %58 = tpu.matmul %56, %57, %cst_19 {dimension_numbers = #tpu.dot_dimension_numbers<[1], [0], [0], [1], [0, 0, 1, 1], [], []>} : vector<8x64xbf16>, vector<64x64xbf16>, vector<8x64xf32> -> vector<8x64xf32>
    %c8 = arith.constant 8 : index
    %c0_20 = arith.constant 0 : index
    %59 = vector.load %arg3[%c8, %c0_20] : memref<40x64xf32, #tpu.memory_space<vmem>>, vector<1x64xf32>
    %60 = vector.broadcast %59 : vector<1x64xf32> to vector<8x64xf32>
    %61 = arith.addf %58, %60 : vector<8x64xf32>
    %c9 = arith.constant 9 : index
    %c0_21 = arith.constant 0 : index
    %62 = vector.load %arg3[%c9, %c0_21] : memref<40x64xf32, #tpu.memory_space<vmem>>, vector<1x64xf32>
    %c10 = arith.constant 10 : index
    %c0_22 = arith.constant 0 : index
    %63 = vector.load %arg3[%c10, %c0_22] : memref<40x64xf32, #tpu.memory_space<vmem>>, vector<1x64xf32>
    %cst_23 = arith.constant dense<0.000000e+00> : vector<8xf32>
    %64 = vector.multi_reduction <add>, %61, %cst_23 [1] : vector<8x64xf32> to vector<8xf32>
    %65 = vector.shape_cast %64 : vector<8xf32> to vector<8x1xf32>
    %cst_24 = arith.constant 1.562500e-02 : f32
    %66 = vector.broadcast %cst_24 : f32 to vector<8x1xf32>
    %67 = arith.mulf %65, %66 : vector<8x1xf32>
    %68 = arith.mulf %61, %61 : vector<8x64xf32>
    %cst_25 = arith.constant dense<0.000000e+00> : vector<8xf32>
    %69 = vector.multi_reduction <add>, %68, %cst_25 [1] : vector<8x64xf32> to vector<8xf32>
    %70 = vector.shape_cast %69 : vector<8xf32> to vector<8x1xf32>
    %cst_26 = arith.constant 1.562500e-02 : f32
    %71 = vector.broadcast %cst_26 : f32 to vector<8x1xf32>
    %72 = arith.mulf %70, %71 : vector<8x1xf32>
    %73 = arith.mulf %67, %67 : vector<8x1xf32>
    %74 = arith.subf %72, %73 : vector<8x1xf32>
    %cst_27 = arith.constant 0.000000e+00 : f32
    %75 = vector.broadcast %cst_27 : f32 to vector<8x1xf32>
    %76 = arith.maximumf %74, %75 : vector<8x1xf32>
    %77 = vector.broadcast %67 : vector<8x1xf32> to vector<8x64xf32>
    %78 = arith.subf %61, %77 : vector<8x64xf32>
    %cst_28 = arith.constant 9.99999974E-6 : f32
    %79 = vector.broadcast %cst_28 : f32 to vector<8x1xf32>
    %80 = arith.addf %76, %79 : vector<8x1xf32>
    %81 = math.rsqrt %80 : vector<8x1xf32>
    %82 = vector.broadcast %81 : vector<8x1xf32> to vector<8x64xf32>
    %83 = arith.mulf %78, %82 : vector<8x64xf32>
    %84 = vector.broadcast %62 : vector<1x64xf32> to vector<8x64xf32>
    %85 = arith.mulf %83, %84 : vector<8x64xf32>
    %86 = vector.broadcast %63 : vector<1x64xf32> to vector<8x64xf32>
    %87 = arith.addf %85, %86 : vector<8x64xf32>
    %cst_29 = arith.constant 0.000000e+00 : f32
    %88 = vector.broadcast %cst_29 : f32 to vector<8x64xf32>
    %89 = arith.cmpf oge, %87, %88 : vector<8x64xf32>
    %cst_30 = arith.constant 4.950000e-01 : f32
    %90 = vector.broadcast %cst_30 : f32 to vector<8x64xf32>
    %91 = arith.mulf %90, %87 : vector<8x64xf32>
    %92 = arith.select %89, %87, %91 : vector<8x64xi1>, vector<8x64xf32>
    %93 = arith.truncf %92 : vector<8x64xf32> to vector<8x64xbf16>
    %c80 = arith.constant 80 : index
    %c0_31 = arith.constant 0 : index
    %94 = vector.load %arg2[%c80, %c0_31] : memref<176x64xbf16, #tpu.memory_space<vmem>>, vector<64x32xbf16>
    %cst_32 = arith.constant dense<0.000000e+00> : vector<8x32xf32>
    %95 = tpu.matmul %93, %94, %cst_32 {dimension_numbers = #tpu.dot_dimension_numbers<[1], [0], [0], [1], [0, 0, 1, 1], [], []>} : vector<8x64xbf16>, vector<64x32xbf16>, vector<8x32xf32> -> vector<8x32xf32>
    %c16_33 = arith.constant 16 : index
    %c0_34 = arith.constant 0 : index
    %96 = vector.load %arg3[%c16_33, %c0_34] : memref<40x64xf32, #tpu.memory_space<vmem>>, vector<1x32xf32>
    %97 = vector.broadcast %96 : vector<1x32xf32> to vector<8x32xf32>
    %98 = arith.addf %95, %97 : vector<8x32xf32>
    %c17 = arith.constant 17 : index
    %c0_35 = arith.constant 0 : index
    %99 = vector.load %arg3[%c17, %c0_35] : memref<40x64xf32, #tpu.memory_space<vmem>>, vector<1x32xf32>
    %c18 = arith.constant 18 : index
    %c0_36 = arith.constant 0 : index
    %100 = vector.load %arg3[%c18, %c0_36] : memref<40x64xf32, #tpu.memory_space<vmem>>, vector<1x32xf32>
    %cst_37 = arith.constant dense<0.000000e+00> : vector<8xf32>
    %101 = vector.multi_reduction <add>, %98, %cst_37 [1] : vector<8x32xf32> to vector<8xf32>
    %102 = vector.shape_cast %101 : vector<8xf32> to vector<8x1xf32>
    %cst_38 = arith.constant 3.125000e-02 : f32
    %103 = vector.broadcast %cst_38 : f32 to vector<8x1xf32>
    %104 = arith.mulf %102, %103 : vector<8x1xf32>
    %105 = arith.mulf %98, %98 : vector<8x32xf32>
    %cst_39 = arith.constant dense<0.000000e+00> : vector<8xf32>
    %106 = vector.multi_reduction <add>, %105, %cst_39 [1] : vector<8x32xf32> to vector<8xf32>
    %107 = vector.shape_cast %106 : vector<8xf32> to vector<8x1xf32>
    %cst_40 = arith.constant 3.125000e-02 : f32
    %108 = vector.broadcast %cst_40 : f32 to vector<8x1xf32>
    %109 = arith.mulf %107, %108 : vector<8x1xf32>
    %110 = arith.mulf %104, %104 : vector<8x1xf32>
    %111 = arith.subf %109, %110 : vector<8x1xf32>
    %cst_41 = arith.constant 0.000000e+00 : f32
    %112 = vector.broadcast %cst_41 : f32 to vector<8x1xf32>
    %113 = arith.maximumf %111, %112 : vector<8x1xf32>
    %114 = vector.broadcast %104 : vector<8x1xf32> to vector<8x32xf32>
    %115 = arith.subf %98, %114 : vector<8x32xf32>
    %cst_42 = arith.constant 9.99999974E-6 : f32
    %116 = vector.broadcast %cst_42 : f32 to vector<8x1xf32>
    %117 = arith.addf %113, %116 : vector<8x1xf32>
    %118 = math.rsqrt %117 : vector<8x1xf32>
    %119 = vector.broadcast %118 : vector<8x1xf32> to vector<8x32xf32>
    %120 = arith.mulf %115, %119 : vector<8x32xf32>
    %121 = vector.broadcast %99 : vector<1x32xf32> to vector<8x32xf32>
    %122 = arith.mulf %120, %121 : vector<8x32xf32>
    %123 = vector.broadcast %100 : vector<1x32xf32> to vector<8x32xf32>
    %124 = arith.addf %122, %123 : vector<8x32xf32>
    %cst_43 = arith.constant 0.000000e+00 : f32
    %125 = vector.broadcast %cst_43 : f32 to vector<8x32xf32>
    %126 = arith.cmpf oge, %124, %125 : vector<8x32xf32>
    %cst_44 = arith.constant 0.824999988 : f32
    %127 = vector.broadcast %cst_44 : f32 to vector<8x32xf32>
    %128 = arith.mulf %127, %124 : vector<8x32xf32>
    %129 = arith.select %126, %124, %128 : vector<8x32xi1>, vector<8x32xf32>
    %130 = arith.truncf %129 : vector<8x32xf32> to vector<8x32xbf16>
    %c144 = arith.constant 144 : index
    %c0_45 = arith.constant 0 : index
    %131 = vector.load %arg2[%c144, %c0_45] : memref<176x64xbf16, #tpu.memory_space<vmem>>, vector<32x16xbf16>
    %cst_46 = arith.constant dense<0.000000e+00> : vector<8x16xf32>
    %132 = tpu.matmul %130, %131, %cst_46 {dimension_numbers = #tpu.dot_dimension_numbers<[1], [0], [0], [1], [0, 0, 1, 1], [], []>} : vector<8x32xbf16>, vector<32x16xbf16>, vector<8x16xf32> -> vector<8x16xf32>
    %c24 = arith.constant 24 : index
    %c0_47 = arith.constant 0 : index
    %133 = vector.load %arg3[%c24, %c0_47] : memref<40x64xf32, #tpu.memory_space<vmem>>, vector<1x16xf32>
    %134 = vector.broadcast %133 : vector<1x16xf32> to vector<8x16xf32>
    %135 = arith.addf %132, %134 : vector<8x16xf32>
    %c25 = arith.constant 25 : index
    %c0_48 = arith.constant 0 : index
    %136 = vector.load %arg3[%c25, %c0_48] : memref<40x64xf32, #tpu.memory_space<vmem>>, vector<1x16xf32>
    %c26 = arith.constant 26 : index
    %c0_49 = arith.constant 0 : index
    %137 = vector.load %arg3[%c26, %c0_49] : memref<40x64xf32, #tpu.memory_space<vmem>>, vector<1x16xf32>
    %cst_50 = arith.constant dense<0.000000e+00> : vector<8xf32>
    %138 = vector.multi_reduction <add>, %135, %cst_50 [1] : vector<8x16xf32> to vector<8xf32>
    %139 = vector.shape_cast %138 : vector<8xf32> to vector<8x1xf32>
    %cst_51 = arith.constant 6.250000e-02 : f32
    %140 = vector.broadcast %cst_51 : f32 to vector<8x1xf32>
    %141 = arith.mulf %139, %140 : vector<8x1xf32>
    %142 = arith.mulf %135, %135 : vector<8x16xf32>
    %cst_52 = arith.constant dense<0.000000e+00> : vector<8xf32>
    %143 = vector.multi_reduction <add>, %142, %cst_52 [1] : vector<8x16xf32> to vector<8xf32>
    %144 = vector.shape_cast %143 : vector<8xf32> to vector<8x1xf32>
    %cst_53 = arith.constant 6.250000e-02 : f32
    %145 = vector.broadcast %cst_53 : f32 to vector<8x1xf32>
    %146 = arith.mulf %144, %145 : vector<8x1xf32>
    %147 = arith.mulf %141, %141 : vector<8x1xf32>
    %148 = arith.subf %146, %147 : vector<8x1xf32>
    %cst_54 = arith.constant 0.000000e+00 : f32
    %149 = vector.broadcast %cst_54 : f32 to vector<8x1xf32>
    %150 = arith.maximumf %148, %149 : vector<8x1xf32>
    %151 = vector.broadcast %141 : vector<8x1xf32> to vector<8x16xf32>
    %152 = arith.subf %135, %151 : vector<8x16xf32>
    %cst_55 = arith.constant 9.99999974E-6 : f32
    %153 = vector.broadcast %cst_55 : f32 to vector<8x1xf32>
    %154 = arith.addf %150, %153 : vector<8x1xf32>
    %155 = math.rsqrt %154 : vector<8x1xf32>
    %156 = vector.broadcast %155 : vector<8x1xf32> to vector<8x16xf32>
    %157 = arith.mulf %152, %156 : vector<8x16xf32>
    %158 = vector.broadcast %136 : vector<1x16xf32> to vector<8x16xf32>
    %159 = arith.mulf %157, %158 : vector<8x16xf32>
    %160 = vector.broadcast %137 : vector<1x16xf32> to vector<8x16xf32>
    %161 = arith.addf %159, %160 : vector<8x16xf32>
    %c32 = arith.constant 32 : index
    %c0_56 = arith.constant 0 : index
    %162 = vector.load %arg3[%c32, %c0_56] : memref<40x64xf32, #tpu.memory_space<vmem>>, vector<1x16xf32>
    %c33 = arith.constant 33 : index
    %c0_57 = arith.constant 0 : index
    %163 = vector.load %arg3[%c33, %c0_57] : memref<40x64xf32, #tpu.memory_space<vmem>>, vector<1x1xf32>
    %164 = vector.broadcast %162 : vector<1x16xf32> to vector<8x16xf32>
    %165 = arith.mulf %161, %164 : vector<8x16xf32>
    %cst_58 = arith.constant dense<0.000000e+00> : vector<8xf32>
    %166 = vector.multi_reduction <add>, %165, %cst_58 [1] : vector<8x16xf32> to vector<8xf32>
    %167 = vector.shape_cast %166 : vector<8xf32> to vector<8x1xf32>
    %168 = vector.broadcast %163 : vector<1x1xf32> to vector<8x1xf32>
    %169 = arith.addf %167, %168 : vector<8x1xf32>
    %c0_59 = arith.constant 0 : index
    %c0_60 = arith.constant 0 : index
    %170 = vector.load %arg4[%c0_59, %c0_60] : memref<8x1xf32, #tpu.memory_space<vmem>>, vector<8x1xf32>
    tpu.vector_store %arg4[%c0_59, %c0_60], %169 {strides = array<i32>} : memref<8x1xf32, #tpu.memory_space<vmem>>, vector<8x1xf32>,
    return
  }
  func.func @transform_0(%arg0: i32) -> (i32, i32) {
    %c0_i32 = arith.constant 0 : i32
    %c0_i32_0 = arith.constant 0 : i32
    return %arg0, %c0_i32 : i32, i32
  }
  func.func @transform_1(%arg0: i32) -> (i32, i32) {
    %c0_i32 = arith.constant 0 : i32
    %c0_i32_0 = arith.constant 0 : i32
    %c0_i32_1 = arith.constant 0 : i32
    return %c0_i32, %c0_i32_0 : i32, i32
  }
  func.func @transform_2(%arg0: i32) -> (i32, i32) {
    %c0_i32 = arith.constant 0 : i32
    %c0_i32_0 = arith.constant 0 : i32
    %c0_i32_1 = arith.constant 0 : i32
    return %c0_i32, %c0_i32_0 : i32, i32
  }
  func.func @transform_3(%arg0: i32) -> (i32, i32) {
    %c0_i32 = arith.constant 0 : i32
    %c0_i32_0 = arith.constant 0 : i32
    return %arg0, %c0_i32 : i32, i32
  }
}

</mosaic_0001>

<bundles_post_ra>
// kernel: tpu_custom_call.1
= control target key start
LH: loop header
LB: loop body
LE: loop exit
PB: predicated region body
PF: predicated region fallthrough
CT: control target
= control target key end

     0   :  { %vm26_vm0 = vcmask 130048   ;;  %v43_v2 = vlaneseq  ;;  %vm48_vm2 = vcmask 523264   ;;  %vm230_vm11 = vcmask 261120   ;;  %s544_s1 = inlined_call_operand.vmem [shape: bf16[176,64], index: 1, kind: input, shape index: {}]   ;;  %s545_s0 = inlined_call_operand.vmem [shape: bf16[8,16], index: 0, kind: input, shape index: {}]   ;;  %s546_s2 = inlined_call_operand.vmem [shape: f32[40,64], index: 2, kind: input, shape index: {}]   ;;  %s547_s3 = inlined_call_operand.vmem [shape: f32[8,1], index: 3, kind: output, shape index: {}]  }
   0x1   :  { %v392_v0 = vld [vmem:[%s544_s1] sm:$0xff]  ;;  %v395_v19 = vld [vmem:[%s544_s1 + $0x18] sm:$0xff]  ;;  %v394_v20 = vld [vmem:[%s544_s1 + $0x10] sm:$0xff] }
   0x2   :  { %v15_v1 = vld [vmem:[%s545_s0] sm:$0xf]  ;;  %37 = vmatpush.bf16.msra.mxu0 %v392_v0  ;;  %v44_v3 = vand.u32 127, %v43_v2  ;;  %v393_v25 = vld [vmem:[%s544_s1 + $0x8] sm:$0xff]  ;;  %v399_v57 = vld [vmem:[%s544_s1 + $0x38] sm:$0xff] }
   0x3   :  { %v403_v4 = vld [vmem:[%s546_s2] ss:$0 sm:$0xff]  ;;  %v404_v39 = vld [vmem:[%s546_s2 + $0x1] ss:$0 sm:$0xff]  ;;  %v405_v42 = vld [vmem:[%s546_s2 + $0x2] ss:$0 sm:$0xff] }
   0x4   :  { %vm45_vm1 = vcmp.lt.s32.totalorder %v44_v3, 32  ;;  %v396_v17 = vld [vmem:[%s544_s1 + $0x20] sm:$0xff]  ;;  %v406_v48 = vld [vmem:[%s546_s2 + $0x8] ss:$0 sm:$0xff]  ;;  %v398_v58 = vld [vmem:[%s544_s1 + $0x30] sm:$0xff] }
   0x5   :  { %348 = vmatmul.msk.bf16.vlgmr.msra.gmra.mxu0 %vm26_vm0, %v15_v1  ;;  %134 = vmatpush.bf16.msra.mxu1 %v396_v17  ;;  %v400_v55 = vld [vmem:[%s544_s1 + $0x40] sm:$0xff]  ;;  %v397_v60 = vld [vmem:[%s544_s1 + $0x28] sm:$0xff] }
   0x6   :  { %219 = vmatpush.bf16.msra.mxu2 %v400_v55 }
   0x9   :  { %135 = vmatpush.bf16.msra.mxu1 %v395_v19  ;;  %v409_v19 = vld [vmem:[%s546_s2 + $0x10] ss:$0 sm:$0xff] }
   0xa   :  { %220 = vmatpush.bf16.msra.mxu2 %v399_v57 }
   0xd   :  { %136 = vmatpush.bf16.msra.mxu1 %v394_v20 }
   0xe   :  { %221 = vmatpush.bf16.msra.mxu2 %v398_v58 }
  0x11   :  { %137 = vmatpush.bf16.msra.mxu1 %v393_v25 }
  0x12   :  { %222 = vmatpush.bf16.msra.mxu2 %v397_v60 }
  0x82   :  { %v39_v5 = vpop.f32.mrf.mxu0 }
  0x83   :  { %v40_v6 = vadd.f32 %v403_v4, %v39_v5 }
  0x85   :  { %v46_v7 = vsel %vm45_vm1, %v40_v6, 0.0 }
  0x86   :  { %v49_v8 = vsel %vm48_vm2, %v46_v7, 0.0  ;;  %v57_v9 = vmul.f32 %v46_v7, %v46_v7  ;;  %v47_v11 = vsub.f32 %v40_v6, %v46_v7 }
  0x87   :  { %50 = vadd.xlane.f32.xlu0 %v49_v8 }
  0x88   :  { %v58_v10 = vsel %vm48_vm2, %v57_v9, 0.0  ;;  %v61_v13 = vmul.f32 %v47_v11, %v47_v11  ;;  %v52_v14 = vsel %vm48_vm2, %v47_v11, 0.0 }
  0x89   :  { %59 = vadd.xlane.f32.xlu1 %v58_v10  ;;  %v407_v10 = vld [vmem:[%s546_s2 + $0x9] ss:$0 sm:$0xff] }
  0x8a   :  { %v41_v12 = vpop.f32.mrf.mxu0  ;;  %v62_v15 = vsel %vm48_vm2, %v61_v13, 0.0  ;;  %v408_v13 = vld [vmem:[%s546_s2 + $0xa] ss:$0 sm:$0xff] }
  0x8f   :  { %53 = vadd.xlane.f32.xlu0 %v52_v14 }
  0x91   :  { %63 = vadd.xlane.f32.xlu1 %v62_v15 }
  0xfa   :  { %v51_v16 = vpop.xlane.xlu0 %50 }
  0xfc   :  { %v60_v18 = vpop.xlane.xlu1 %59 }
 0x102   :  { %v54_v21 = vpop.xlane.xlu0 %53 }
 0x103   :  { %v55_v22 = vsel %vm45_vm1, %v51_v16, %v54_v21 }
 0x104   :  { %v56_v23 = vmul.f32 0.03125, %v55_v22  ;;  %v64_v24 = vpop.xlane.xlu1 %63 }
 0x105   :  { %v65_v26 = vsel %vm45_vm1, %v60_v18, %v64_v24 }
 0x106   :  { %v67_v27 = vmul.f32 %v56_v23, %v56_v23  ;;  %v66_v28 = vmul.f32 0.03125, %v65_v26  ;;  %v70_v38 = vsub.f32 %v40_v6, %v56_v23  ;;  %v402_v26 = vld [vmem:[%s544_s1 + $0x50] sm:$0xff] }
 0x107   :  { %291 = vmatpush.bf16.msra.mxu3 %v402_v26 }
 0x108   :  { %v68_v29 = vsub.f32 %v66_v28, %v67_v27  ;;  %v401_v27 = vld [vmem:[%s544_s1 + $0x48] sm:$0xff] }
 0x10a   :  { %v69_v30 = vmax.f32 %v68_v29, 0.0 }
 0x10b   :  { %292 = vmatpush.bf16.msra.mxu3 %v401_v27 }
 0x10c   :  { %v71_v31 = vadd.f32 1e-05, %v69_v30 }
 0x10e   :  { %417 = vrsqrt.f32 %v71_v31  ;;  %vm78_vm4 = vweird.f32 %v71_v31 }
 0x114   :  { %v418_v32 = vpop.eup %417 }
 0x115   :  { %v73_v33 = vmul.f32 %v418_v32, %v71_v31  ;;  %vm79_vm3 = vweird.f32 %v418_v32 }
 0x116   :  { %vm80_vm5 = vmor %vm78_vm4, %vm79_vm3  ;;  %vm338_vm4 = vcmask 7168  }
 0x117   :  { %v74_v34 = vmul.f32 %v418_v32, %v73_v33 }
 0x119   :  { %v75_v35 = vmul.f32 0.5, %v74_v34 }
 0x11b   :  { %v76_v36 = vsub.f32 1.5, %v75_v35 }
 0x11d   :  { %v77_v37 = vmul.f32 %v418_v32, %v76_v36 }
 0x11f   :  { %v81_v40 = vsel %vm80_vm5, %v418_v32, %v77_v37 }
 0x120   :  { %v82_v41 = vmul.f32 %v81_v40, %v70_v38 }
 0x122   :  { %v85_v43 = vmul.f32 %v404_v39, %v82_v41 }
 0x124   :  { %v88_v44 = vadd.f32 %v405_v42, %v85_v43  ;;  %v410_v43 = vld [vmem:[%s546_s2 + $0x11] ss:$0 sm:$0xff] }
 0x126   :  { %vm89_vm6 = vcmp.ge.f32.partialorder %v88_v44, 0.0  ;;  %v90_v45 = vmul.f32 0.17, %v88_v44 }
 0x128   :  { %v91_v46 = vsel %vm89_vm6, %v88_v44, %v90_v45 }
 0x129   :  { %v92_v47 = vpack.c.bf16 %v91_v46, %v91_v46  ;;  %v411_v46 = vld [vmem:[%s546_s2 + $0x12] ss:$0 sm:$0xff] }
 0x12b   :  { %365 = vmatmul.msk.bf16.vlgmr.msra.gmra.mxu1 %vm48_vm2, %v92_v47 }
 0x1a8   :  { %v139_v49 = vpop.f32.mrf.mxu1 }
 0x1a9   :  { %v140_v50 = vadd.f32 %v406_v48, %v139_v49 }
 0x1ab   :  { %v145_v51 = vsel %vm48_vm2, %v140_v50, 0.0  ;;  %v149_v52 = vmul.f32 %v140_v50, %v140_v50 }
 0x1ac   :  { %146 = vadd.xlane.f32.xlu2 %v145_v51 }
 0x1ad   :  { %v150_v54 = vsel %vm48_vm2, %v149_v52, 0.0  ;;  %v412_v52 = vld [vmem:[%s546_s2 + $0x18] ss:$0 sm:$0xff] }
 0x1b0   :  { %v141_v53 = vpop.f32.mrf.mxu1 }
 0x1b4   :  { %151 = vadd.xlane.f32.xlu2 %v150_v54 }
 0x21f   :  { %v147_v56 = vpop.xlane.xlu2 %146 }
 0x220   :  { %v148_v59 = vmul.f32 0.015625, %v147_v56 }
 0x222   :  { %v154_v62 = vmul.f32 %v148_v59, %v148_v59  ;;  %v157_v9 = vsub.f32 %v140_v50, %v148_v59 }
 0x227   :  { %v152_v61 = vpop.xlane.xlu2 %151 }
 0x228   :  { %v153_v63 = vmul.f32 0.015625, %v152_v61 }
 0x22a   :  { %v155_v0 = vsub.f32 %v153_v63, %v154_v62 }
 0x22c   :  { %v156_v1 = vmax.f32 %v155_v0, 0.0 }
 0x22e   :  { %v158_v2 = vadd.f32 1e-05, %v156_v1 }
 0x230   :  { %419 = vrsqrt.f32 %v158_v2  ;;  %vm165_vm8 = vweird.f32 %v158_v2 }
 0x236   :  { %v420_v3 = vpop.eup %419 }
 0x237   :  { %v160_v4 = vmul.f32 %v420_v3, %v158_v2  ;;  %vm166_vm7 = vweird.f32 %v420_v3 }
 0x238   :  { %vm167_vm9 = vmor %vm165_vm8, %vm166_vm7 }
 0x239   :  { %v161_v5 = vmul.f32 %v420_v3, %v160_v4 }
 0x23b   :  { %v162_v6 = vmul.f32 0.5, %v161_v5 }
 0x23d   :  { %v163_v7 = vsub.f32 1.5, %v162_v6 }
 0x23f   :  { %v164_v8 = vmul.f32 %v420_v3, %v163_v7 }
 0x241   :  { %v168_v11 = vsel %vm167_vm9, %v420_v3, %v164_v8 }
 0x242   :  { %v169_v12 = vmul.f32 %v168_v11, %v157_v9 }
 0x244   :  { %v171_v14 = vmul.f32 %v407_v10, %v169_v12  ;;  %v413_v10 = vld [vmem:[%s546_s2 + $0x19] ss:$0 sm:$0xff] }
 0x246   :  { %v173_v15 = vadd.f32 %v408_v13, %v171_v14  ;;  %v414_v13 = vld [vmem:[%s546_s2 + $0x1a] ss:$0 sm:$0xff] }
 0x248   :  { %vm174_vm10 = vcmp.ge.f32.partialorder %v173_v15, 0.0  ;;  %v175_v16 = vmul.f32 0.495, %v173_v15 }
 0x24a   :  { %v176_v17 = vsel %vm174_vm10, %v173_v15, %v175_v16  ;;  %v415_v15 = vld [vmem:[%s546_s2 + $0x20] ss:$0 sm:$0xff] }
 0x24b   :  { %v177_v18 = vpack.c.bf16 %v176_v17, %v176_v17 }
 0x24d   :  { %382 = vmatmul.msk.bf16.vlgmr.msra.gmra.mxu2 %vm48_vm2, %v177_v18 }
 0x2d0   :  { %v224_v20 = vpop.f32.mrf.mxu2 }
 0x2d1   :  { %v225_v21 = vadd.f32 %v409_v19, %v224_v20  ;;  %v416_v19 = vld [vmem:[%s546_s2 + $0x21] ss:$0 sm:$0xff] }
 0x2d3   :  { %v231_v22 = vsel %vm230_vm11, %v225_v21, 0.0  ;;  %v235_v23 = vmul.f32 %v225_v21, %v225_v21 }
 0x2d4   :  { %232 = vadd.xlane.f32.xlu0 %v231_v22 }
 0x2d5   :  { %v236_v24 = vsel %vm230_vm11, %v235_v23, 0.0 }
 0x2d6   :  { %237 = vadd.xlane.f32.xlu1 %v236_v24 }
 0x2d8   :  { %v226_v25 = vpop.f32.mrf.mxu2 }
 0x347   :  { %v233_v28 = vpop.xlane.xlu0 %232 }
 0x348   :  { %v234_v29 = vmul.f32 0.03125, %v233_v28 }
 0x349   :  { %v238_v30 = vpop.xlane.xlu1 %237 }
 0x34a   :  { %v240_v31 = vmul.f32 %v234_v29, %v234_v29  ;;  %v239_v32 = vmul.f32 0.03125, %v238_v30  ;;  %v243_v42 = vsub.f32 %v225_v21, %v234_v29 }
 0x34c   :  { %v241_v33 = vsub.f32 %v239_v32, %v240_v31 }
 0x34e   :  { %v242_v34 = vmax.f32 %v241_v33, 0.0 }
 0x350   :  { %v244_v35 = vadd.f32 1e-05, %v242_v34 }
 0x352   :  { %421 = vrsqrt.f32 %v244_v35  ;;  %vm251_vm13 = vweird.f32 %v244_v35 }
 0x358   :  { %v422_v36 = vpop.eup %421 }
 0x359   :  { %v246_v37 = vmul.f32 %v422_v36, %v244_v35  ;;  %vm252_vm12 = vweird.f32 %v422_v36 }
 0x35a   :  { %vm253_vm14 = vmor %vm251_vm13, %vm252_vm12 }
 0x35b   :  { %v247_v38 = vmul.f32 %v422_v36, %v246_v37 }
 0x35d   :  { %v248_v39 = vmul.f32 0.5, %v247_v38 }
 0x35f   :  { %v249_v40 = vsub.f32 1.5, %v248_v39 }
 0x361   :  { %v250_v41 = vmul.f32 %v422_v36, %v249_v40 }
 0x363   :  { %v254_v44 = vsel %vm253_vm14, %v422_v36, %v250_v41 }
 0x364   :  { %v255_v45 = vmul.f32 %v254_v44, %v243_v42 }
 0x366   :  { %v257_v47 = vmul.f32 %v410_v43, %v255_v45 }
 0x368   :  { %v259_v48 = vadd.f32 %v411_v46, %v257_v47 }
 0x36a   :  { %vm260_vm15 = vcmp.ge.f32.partialorder %v259_v48, 0.0  ;;  %v261_v49 = vmul.f32 0.825, %v259_v48 }
 0x36c   :  { %v262_v50 = vsel %vm260_vm15, %v259_v48, %v261_v49 }
 0x36d   :  { %v263_v51 = vpack.c.bf16 %v262_v50, %v262_v50 }
 0x36f   :  { %391 = vmatmul.msk.bf16.vlgmr.msra.gmra.mxu3 %vm230_vm11, %v263_v51 }
 0x3f2   :  { %v294_v53 = vpop.f32.mrf.mxu3 }
 0x3f3   :  { %v295_v54 = vadd.f32 %v412_v52, %v294_v53 }
 0x3f5   :  { %v300_v55 = vsel %vm26_vm0, %v295_v54, 0.0  ;;  %v304_v56 = vmul.f32 %v295_v54, %v295_v54 }
 0x3f6   :  { %301 = vadd.xlane.f32.xlu2 %v300_v55 }
 0x3f7   :  { %v305_v57 = vsel %vm26_vm0, %v304_v56, 0.0 }
 0x3f8   :  { %306 = vadd.xlane.f32.xlu0 %v305_v57 }
 0x3fa   :  { %v296_v58 = vpop.f32.mrf.mxu3 }
 0x469   :  { %v302_v59 = vpop.xlane.xlu2 %301 }
 0x46a   :  { %v303_v60 = vmul.f32 0.0625, %v302_v59 }
 0x46b   :  { %v307_v61 = vpop.xlane.xlu0 %306 }
 0x46c   :  { %v309_v62 = vmul.f32 %v303_v60, %v303_v60  ;;  %v308_v63 = vmul.f32 0.0625, %v307_v61  ;;  %v312_v9 = vsub.f32 %v295_v54, %v303_v60 }
 0x46e   :  { %v310_v0 = vsub.f32 %v308_v63, %v309_v62 }
 0x470   :  { %v311_v1 = vmax.f32 %v310_v0, 0.0 }
 0x472   :  { %v313_v2 = vadd.f32 1e-05, %v311_v1 }
 0x474   :  { %423 = vrsqrt.f32 %v313_v2  ;;  %vm320_vm2 = vweird.f32 %v313_v2 }
 0x47a   :  { %v424_v3 = vpop.eup %423 }
 0x47b   :  { %v315_v4 = vmul.f32 %v424_v3, %v313_v2  ;;  %vm321_vm1 = vweird.f32 %v424_v3 }
 0x47c   :  { %vm322_vm3 = vmor %vm320_vm2, %vm321_vm1 }
 0x47d   :  { %v316_v5 = vmul.f32 %v424_v3, %v315_v4 }
 0x47f   :  { %v317_v6 = vmul.f32 0.5, %v316_v5 }
 0x481   :  { %v318_v7 = vsub.f32 1.5, %v317_v6 }
 0x483   :  { %v319_v8 = vmul.f32 %v424_v3, %v318_v7 }
 0x485   :  { %v323_v11 = vsel %vm322_vm3, %v424_v3, %v319_v8 }
 0x486   :  { %v324_v12 = vmul.f32 %v323_v11, %v312_v9 }
 0x488   :  { %v326_v14 = vmul.f32 %v413_v10, %v324_v12 }
 0x48a   :  { %v328_v16 = vadd.f32 %v414_v13, %v326_v14 }
 0x48c   :  { %v332_v17 = vmul.f32 %v415_v15, %v328_v16 }
 0x48e   :  { %v333_v18 = vsel %vm26_vm0, %v332_v17, 0.0 }
 0x48f   :  { %334 = vadd.xlane.f32.xlu1 %v333_v18 }
 0x502   :  { %v335_v20 = vpop.xlane.xlu1 %334 }
 0x503   :  { %v337_v21 = vadd.f32 %v416_v19, %v335_v20 }
 0x505   :  { %339 = vst.msk [vmem:[%s547_s3] sm:$0xff] %vm338_vm4, %v337_v21 }

</bundles_post_ra>
